<compile_context>
chip_gen: v6e
topology: v6e:2x2x1
jax: 0.10.0
libtpu: 0.0.40
codegen_flags: <defaults>
</compile_context>

<pallas_src>
import os

import jax
import jax.numpy as jnp
from jax import lax
from jax.experimental import pallas as pl
from jax.experimental.pallas import tpu as pltpu


# ----------------------------------------------------------------------------
# Pallas kernel: one im2col GEMM tile + bias + ReLU.
#   p_ref : (K, tile_M)     im2col patches, bf16   (K = 9*Cin, lanes = spatial*batch)
#   w_ref : (Cout, K)       reshaped conv weight, bf16
#   b_ref : (Cout, 1)       bias, f32
#   o_ref : (Cout, tile_M)  output, f32 (lane-dense: tile_M is a multiple of 128)
# ----------------------------------------------------------------------------
def _conv_gemm_relu_kernel(p_ref, w_ref, b_ref, o_ref):
    acc = jnp.dot(w_ref[...], p_ref[...], preferred_element_type=jnp.float32)
    acc = acc + b_ref[...]           # (Cout, 1) broadcasts over lanes
    acc = jnp.maximum(acc, 0.0)      # ReLU in f32 on the accumulator
    o_ref[...] = acc.astype(o_ref.dtype)


def _pick_tile_m(m_total, max_tile=2048):
    """Largest lane tile <= max_tile that divides m_total (m_total % 128 == 0)."""
    if m_total <= max_tile:
        return m_total
    for t in range(max_tile, 127, -128):
        if m_total % t == 0:
            return t
    return 128


def conv3x3_relu_nchw(x_nchw, w2_bf16, bias_f32):
    """3x3 same-padded conv + bias + ReLU.  NCHW in, NCHW out.

    x_nchw  : (N, Cin, H, W) f32
    w2_bf16 : (Cout, Cin*9)  bf16, K axis ordered (cin, kh, kw)
    bias_f32: (Cout,)        f32
    """
    N, Cin, H, W = x_nchw.shape
    Cout, K = w2_bf16.shape
    M_total = N * H * W
    assert M_total % 128 == 0, "N*H*W must be a multiple of 128 for lane tiling"

    # im2col in the wrapper, entirely in bf16 (single XLA fusion).  Batch is
    # folded onto the lane axis so the kernel sees one wide GEMM; the K axis
    # is ordered (cin, kh, kw) to match the OIHW weight reshape.
    x_bf = x_nchw.astype(jnp.bfloat16)
    x_pad = jnp.pad(x_bf, ((0, 0), (0, 0), (1, 1), (1, 1)))
    taps = [x_pad[:, :, kh:kh + H, kw:kw + W]
            for kh in range(3) for kw in range(3)]          # 9 x (N,Cin,H,W)
    patches = jnp.stack(taps, axis=2)                       # (N, Cin, 9, H, W)
    patches = patches.transpose(1, 2, 0, 3, 4)              # (Cin, 9, N, H, W)
    patches = patches.reshape(K, M_total)                   # (K, N*H*W) bf16

    bias2d = bias_f32.reshape(Cout, 1)

    tile_m = _pick_tile_m(M_total)
    grid_m = M_total // tile_m   # == 1 at toy sizes; >1 only when spatial grows

    out = pl.pallas_call(
        _conv_gemm_relu_kernel,
        out_shape=jax.ShapeDtypeStruct((Cout, M_total), jnp.float32),
        grid_spec=pltpu.PrefetchScalarGridSpec(
            num_scalar_prefetch=0,
            grid=(grid_m,),
            in_specs=[
                pl.BlockSpec((K, tile_m), lambda m: (0, m)),
                pl.BlockSpec((Cout, K), lambda m: (0, 0)),
                pl.BlockSpec((Cout, 1), lambda m: (0, 0)),
            ],
            out_specs=pl.BlockSpec((Cout, tile_m), lambda m: (0, m)),
        ),
        compiler_params=pltpu.CompilerParams(
            # Lane-axis tiles are independent -> shard across v7x TensorCores
            # when grid_m > 1; no-op (and no per-step cost) when grid_m == 1.
            dimension_semantics=("parallel",),
            # Keep well under v7x's 64 MiB VMEM / 32 MiB scoped default even
            # with double-buffered (K, tile_m) bf16 patch blocks.
            vmem_limit_bytes=32 * 1024 * 1024,
        ),
    )(patches, w2_bf16, bias2d)

    # (Cout, N*H*W) -> (N, Cout, H, W).  Only the two leading (non-lane) axes
    # swap; the lane-major layout is untouched.
    return out.reshape(Cout, N, H, W).transpose(1, 0, 2, 3)


# ----------------------------------------------------------------------------
# Wrapped module: Conv2d(Cin, Cout, k=3, pad=1, bias=True) + ReLU, NCHW
# interface matching PyTorch, deterministic parameter init.
# ----------------------------------------------------------------------------
class ConvReluModule:
    def __init__(self, in_channels, out_channels, key):
        k_w, k_b = jax.random.split(key)
        fan_in = in_channels * 3 * 3
        bound = 1.0 / jnp.sqrt(jnp.float32(fan_in))
        # OIHW weight (PyTorch layout), f32 master copy.
        self.weight = jax.random.uniform(
            k_w, (out_channels, in_channels, 3, 3),
            minval=-bound, maxval=bound, dtype=jnp.float32)
        self.bias = jax.random.uniform(
            k_b, (out_channels,), minval=-bound, maxval=bound,
            dtype=jnp.float32)
        # Pre-laid-out GEMM weight: (Cout, Cin*9), bf16 MXU operand.
        self.w2 = self.weight.reshape(
            out_channels, in_channels * 9).astype(jnp.bfloat16)

    def __call__(self, x_nchw):
        return conv3x3_relu_nchw(x_nchw, self.w2, self.bias)


# ----------------------------------------------------------------------------
# ClassyBlock: thin wrapper recording the wrapped module's output.
# NOTE: `self.output = output` is an eager Python attribute; if forward() is
# ever wrapped in jax.jit it would capture a tracer, matching the PyTorch
# caveat about stateful recording.
# ----------------------------------------------------------------------------
class ClassyBlock:
    def __init__(self, name, module):
        self.name = name
        self.output = jnp.zeros((0,), dtype=jnp.float32)
        self._module = module
        self._is_output_stateless = (
            os.environ.get("CLASSY_BLOCK_STATELESS") == "1"
        )

    def wrapped_module(self):
        return self._module

    def forward(self, inp):
        if self._is_output_stateless:
            return self._module(inp)
        output = self._module(inp)
        self.output = output
        return output

    __call__ = forward


if __name__ == "__main__":
    key = jax.random.PRNGKey(0)
    k_x, k_m = jax.random.split(key)

    # Small NCHW input consistent with a conv-style wrapped module.
    N, C, H, W = 2, 4, 16, 16
    Cout = 8
    x = jax.random.normal(k_x, (N, C, H, W), dtype=jnp.float32)

    block = ClassyBlock("block0", ConvReluModule(C, Cout, k_m))
    y = block(x)
    y = jax.block_until_ready(y)

    # Sanity: recorded output matches returned output; shape (N, Cout, H, W).
    assert y.shape == (N, Cout, H, W)
    assert block.output is y
    assert bool(jnp.all(y >= 0.0))  # ReLU

    # Numerical check vs a reference conv on the same bf16-quantized operands
    # (the kernel accumulates in f32, so only rounding-order differences).
    xq = x.astype(jnp.bfloat16).astype(jnp.float32)
    wq = block.wrapped_module().weight.astype(jnp.bfloat16).astype(jnp.float32)
    ref = lax.conv_general_dilated(
        xq, wq, window_strides=(1, 1), padding="SAME",
        dimension_numbers=("NCHW", "OIHW", "NCHW"),
        precision=lax.Precision.HIGHEST)
    ref = jnp.maximum(
        ref + block.wrapped_module().bias.reshape(1, -1, 1, 1), 0.0)
    assert float(jnp.max(jnp.abs(y - ref))) < 1e-3

    print("KERNEL_OK")
</pallas_src>

<mosaic_0001>
module attributes {stable_mosaic.version = 11 : i64} {
  func.func @_conv_gemm_relu_kernel(%arg0: i32, %arg1: memref<36x512xbf16, #tpu.memory_space<vmem>>, %arg2: memref<8x36xbf16, #tpu.memory_space<vmem>>, %arg3: memref<8x1xf32, #tpu.memory_space<vmem>>, %arg4: memref<8x512xf32, #tpu.memory_space<vmem>>) attributes {dimension_semantics = [#tpu.dimension_semantics<parallel>], iteration_bounds = array<i64: 1>, scalar_prefetch = 0 : i64, scratch_operands = 0 : i64, tpu.core_type = #tpu.core_type<tc>, window_params = [{transform_indices = @transform_0, window_bounds = array<i64: 36, 512>}, {pipeline_mode = #tpu.pipeline_mode<synchronous>, transform_indices = @transform_1, window_bounds = array<i64: 8, 36>}, {pipeline_mode = #tpu.pipeline_mode<synchronous>, transform_indices = @transform_2, window_bounds = array<i64: 8, 1>}, {transform_indices = @transform_3, window_bounds = array<i64: 8, 512>}]} {
    %c0 = arith.constant 0 : index
    %c0_0 = arith.constant 0 : index
    %0 = vector.load %arg2[%c0, %c0_0] : memref<8x36xbf16, #tpu.memory_space<vmem>>, vector<8x36xbf16>
    %c0_1 = arith.constant 0 : index
    %c0_2 = arith.constant 0 : index
    %1 = vector.load %arg1[%c0_1, %c0_2] : memref<36x512xbf16, #tpu.memory_space<vmem>>, vector<36x512xbf16>
    %cst = arith.constant dense<0.000000e+00> : vector<8x512xf32>
    %2 = tpu.matmul %0, %1, %cst {dimension_numbers = #tpu.dot_dimension_numbers<[1], [0], [0], [1], [0, 0, 1, 1], [], []>} : vector<8x36xbf16>, vector<36x512xbf16>, vector<8x512xf32> -> vector<8x512xf32>
    %c0_3 = arith.constant 0 : index
    %c0_4 = arith.constant 0 : index
    %3 = vector.load %arg3[%c0_3, %c0_4] : memref<8x1xf32, #tpu.memory_space<vmem>>, vector<8x1xf32>
    %4 = vector.broadcast %3 : vector<8x1xf32> to vector<8x512xf32>
    %5 = arith.addf %2, %4 : vector<8x512xf32>
    %cst_5 = arith.constant 0.000000e+00 : f32
    %6 = vector.broadcast %cst_5 : f32 to vector<8x512xf32>
    %7 = arith.maximumf %5, %6 : vector<8x512xf32>
    %c0_6 = arith.constant 0 : index
    %c0_7 = arith.constant 0 : index
    %8 = vector.load %arg4[%c0_6, %c0_7] : memref<8x512xf32, #tpu.memory_space<vmem>>, vector<8x512xf32>
    tpu.vector_store %arg4[%c0_6, %c0_7], %7 {strides = array<i32>} : memref<8x512xf32, #tpu.memory_space<vmem>>, vector<8x512xf32>,
    return
  }
  func.func @transform_0(%arg0: i32) -> (i32, i32) {
    %c0_i32 = arith.constant 0 : i32
    %c0_i32_0 = arith.constant 0 : i32
    return %c0_i32, %arg0 : i32, i32
  }
  func.func @transform_1(%arg0: i32) -> (i32, i32) {
    %c0_i32 = arith.constant 0 : i32
    %c0_i32_0 = arith.constant 0 : i32
    %c0_i32_1 = arith.constant 0 : i32
    return %c0_i32, %c0_i32_0 : i32, i32
  }
  func.func @transform_2(%arg0: i32) -> (i32, i32) {
    %c0_i32 = arith.constant 0 : i32
    %c0_i32_0 = arith.constant 0 : i32
    %c0_i32_1 = arith.constant 0 : i32
    return %c0_i32, %c0_i32_0 : i32, i32
  }
  func.func @transform_3(%arg0: i32) -> (i32, i32) {
    %c0_i32 = arith.constant 0 : i32
    %c0_i32_0 = arith.constant 0 : i32
    return %c0_i32, %arg0 : i32, i32
  }
}

</mosaic_0001>

<bundles_post_ra>
// kernel: tpu_custom_call.1
= control target key start
LH: loop header
LB: loop body
LE: loop exit
PB: predicated region body
PF: predicated region fallthrough
CT: control target
= control target key end

     0   :  { %8 = vsyncpa [#allocation3], 0  ;;  %s338_s0 = inlined_call_operand.hbm [shape: bf16[36,512], index: 0, kind: input, shape index: {}]   ;;  %s339_s1 = inlined_call_operand.vmem [shape: bf16[8,36], index: 1, kind: input, shape index: {}]   ;;  %s340_s2 = inlined_call_operand.vmem [shape: f32[8,1], index: 2, kind: input, shape index: {}]   ;;  %s341_s3 = inlined_call_operand.hbm [shape: f32[8,512], index: 3, kind: output, shape index: {}]  }
   0x1   :  { %9 = vsyncpa [#allocation4], 0  ;;  %s301_s12 = smov [#allocation2]  }
   0x2   :  { %s15_s13 = sshll.u32 %s301_s12, 4  ;;  %s16_s13 = int_to_ptr.vmem [resolvable:$true] %s15_s13 }
   0x3   :  { %s265_s14 = scalar_lea.vmem %s16_s13, 1280  ;;  %p270_p1 = scmp.lt.s32.totalorder %s16_s13, %s16_s13 }
   0x4   :  { %p266_p0 = scmp.ne.s32.totalorder %s16_s13, %s265_s14  ;;  %p271_p2 = scmp.lt.s32.totalorder %s265_s14, %s265_s14 }
   0x6   :  { %p272_p3 = por %p271_p2, %p270_p1 }
   0x8   :  { %p273_p4 = pnand %p272_p3, %p266_p0 }
   0xa   :  { %276 = shalt.err (!%p273_p4)
}
   0xb   :  { %s302_s15 = smov 256   ;;  %s303_s16 = smov 16  }
   0xc   :  { %21 = dma.hbm_to_vmem [thread:$0]  %s338_s0, 1280, %s16_s13, [#allocation3], %s302_s15, %s302_s15, %s303_s16  }
   0xd   :  { %297 = dma.done.wait [#allocation3], 1280  }
   0xe   :  { %298 = vsyncadd [#allocation3], 4294966016  ;;  %v304_v0 = vmov 0   ;;  %v39_v1 = vld [vmem:[#allocation2 + $0x40] sm:$0x33]  ;;  %vm101_vm0 = vcmask 1041408  }
   0xf   :  { %146 = vmatprep.mubr.bf16.mxu0 %v304_v0  ;;  %187 = vmatprep.mubr.bf16.mxu1 %v304_v0  ;;  %v40_v2 = vld [vmem:[#allocation2 + $0x48] sm:$0x33]  ;;  %v228_v3 = vcombine.high %v39_v1, %v39_v1  ;;  %v227_v5 = vcombine.low %v39_v1, %v39_v1  ;;  %v245_v7 = vld [vmem:[#allocation2 + $0x24] ss:$16 sps:$4 sm:$0xff]   ;;  %v249_v11 = vld [vmem:[#allocation2 + $0x20] ss:$16 sps:$4 sm:$0xff]  }
  0x10   :  { %240 = vset.pattern.permute.xlu0 %v304_v0  ;;  %v230_v4 = vcombine.high %v40_v2, %v40_v2  ;;  %v229_v6 = vcombine.low %v40_v2, %v40_v2  ;;  %v247_v8 = vld [vmem:[#allocation2 + $0x2c] ss:$16 sps:$4 sm:$0xff]   ;;  %v250_v12 = vld [vmem:[#allocation2 + $0x28] ss:$16 sps:$4 sm:$0xff]   ;;  %v251_v13 = vld [vmem:[#allocation2 + $0x4] ss:$16 sps:$4 sm:$0xff]  }
  0x11   :  { %231 = vmatprep.subr.msk.bf16.mxu0 %vm101_vm0, %v228_v3  ;;  %v103_v9 = vsel %vm101_vm0, %v227_v5, 0  ;;  %v253_v14 = vld [vmem:[#allocation2 + $0xc] ss:$16 sps:$4 sm:$0xff]   ;;  %v41_v15 = vld [vmem:[%s340_s2] sm:$0xff]  ;;  %v256_v17 = vld [vmem:[#allocation2 + $0x8] ss:$16 sps:$4 sm:$0xff]  }
  0x12   :  { %233 = vmatprep.subr.msk.bf16.mxu1 %vm101_vm0, %v230_v4  ;;  %v109_v10 = vsel %vm101_vm0, %v229_v6, 0  ;;  %125 = vmatpush1.bf16.msra.mxu0 %v103_v9  ;;  %v255_v16 = vld [vmem:[#allocation2] ss:$16 sps:$4 sm:$0xff]   ;;  %vm97_vm1 = vcmask 293888   ;;  %s305_s2 = smov [#allocation5]  }
  0x13   :  { %166 = vmatpush1.bf16.msra.mxu1 %v109_v10  ;;  %126 = vmatprep.subr.bf16.mxu0 %v245_v7  ;;  %v30_v18 = vld [vmem:[%s339_s1] sm:$0xf]  ;;  %s210_s22 = sshll.u32 %s305_s2, 4  ;;  %s211_s22 = int_to_ptr.vmem [resolvable:$true] %s210_s22 }
  0x14   :  { %167 = vmatprep.subr.bf16.mxu1 %v247_v8  ;;  %44 = vperm.xlu0 %240, %v41_v15   ;;  %s277_s1 = scalar_lea.vmem %s211_s22, 512  ;;  %p282_p6 = scmp.lt.s32.totalorder %s211_s22, %s211_s22 }
  0x15   :  { %p278_p5 = scmp.ne.s32.totalorder %s211_s22, %s277_s1  ;;  %p283_p7 = scmp.lt.s32.totalorder %s277_s1, %s277_s1 }
  0x16   :  { %127 = vmatpush1.bf16.msra.mxu0 %v249_v11 }
  0x17   :  { %168 = vmatpush1.bf16.msra.mxu1 %v250_v12  ;;  %128 = vmatprep.subr.bf16.mxu0 %v251_v13  ;;  %p284_p8 = por %p283_p7, %p282_p6 }
  0x18   :  { %169 = vmatprep.subr.bf16.mxu1 %v253_v14 }
  0x19   :  { %p285_p9 = pnand %p284_p8, %p278_p5 }
  0x1a   :  { %129 = vmatpush1.bf16.msra.mxu0 %v255_v16 }
  0x1b   :  { %170 = vmatpush1.bf16.msra.mxu1 %v256_v17 }
  0x1d   :  { %232 = vmatmul.mubr.msk.bf16.vlgmr.msra.gmra.mxu0 %vm97_vm1, %v30_v18 }
  0x1e   :  { %234 = vmatmul.mubr.msk.bf16.vlgmr.msra.gmra.mxu1 %vm97_vm1, %v30_v18 }
  0x8f   :  { %v45_v19 = vpop.permute.xlu0 %44 }
  0xdd   :  { %v148_v20 = vpop.f32.mrf.mxu0 }
  0xde   :  { %v189_v21 = vpop.f32.mrf.mxu1  ;;  %v149_v22 = vadd.f32 %v148_v20, %v45_v19 }
  0xdf   :  { %v190_v23 = vadd.f32 %v189_v21, %v45_v19  ;;  %v150_v24 = vpop.f32.mrf.mxu0 }
  0xe0   :  { %v191_v25 = vpop.f32.mrf.mxu1  ;;  %v196_v26 = vmax.f32 %v149_v22, 0.0  ;;  %v151_v28 = vadd.f32 %v150_v24, %v45_v19 }
  0xe1   :  { %v198_v27 = vmax.f32 %v190_v23, 0.0  ;;  %v192_v29 = vadd.f32 %v191_v25, %v45_v19  ;;  %v152_v30 = vpop.f32.mrf.mxu0 }
  0xe2   :  { %v193_v31 = vpop.f32.mrf.mxu1  ;;  %200 = vst [vmem:[#allocation5] sm:$0xff] %v196_v26  ;;  %v197_v32 = vmax.f32 %v151_v28, 0.0 }
  0xe3   :  { %202 = vst [vmem:[#allocation5 + $0x10] sm:$0xff] %v198_v27  ;;  %v199_v33 = vmax.f32 %v192_v29, 0.0  ;;  %v153_v34 = vpop.f32.mrf.mxu0 }
  0xe4   :  { %v194_v35 = vpop.f32.mrf.mxu1  ;;  %201 = vst [vmem:[#allocation5 + $0x8] sm:$0xff] %v197_v32 }
  0xe5   :  { %203 = vst [vmem:[#allocation5 + $0x18] sm:$0xff] %v199_v33 }
  0xe6   :  { %288 = shalt.err (!%p285_p9)
}
  0xe7   :  { %213 = dma.vmem_to_hbm [thread:$0]  %s211_s22, 512, %s341_s3, [#allocation4]  }
  0xe8   :  { %299 = dma.done.wait [#allocation4], 512  }
  0xe9   :  { %300 = vsyncadd [#allocation4], 4294966784 }
  0xea   :  { %217 = vsyncpa [#allocation3], 1 }
  0xeb   :  { %218 = vsyncpa [#allocation4], 1 }

</bundles_post_ra>
